<compile_context>
chip_gen: v5e
topology: v5e:2x2
jax: 0.10.0
libtpu: 0.0.40
codegen_flags: <defaults>
</compile_context>

<pallas_src>
import jax
import jax.numpy as jnp
from jax import lax
from jax.experimental import pallas as pl
from jax.experimental.pallas import tpu as pltpu


def _round_up(v, m):
    return (v + m - 1) // m * m


_VMEM_LIMIT = 32 * 1024 * 1024          # explicit scoped-VMEM limit (safe on v5e/v6e/v7x)
_MATMUL_VMEM_BUDGET = 12 * 1024 * 1024  # double-buffered working set (< v5e's 16 MiB default)
_APPLY_VMEM_BUDGET = 8 * 1024 * 1024


# -----------------------------------------------------------------------------
# Conv-as-matmul kernels (bf16 operands, f32 accumulation on the MXU).
# Grid is (j over Cout tiles, i over M tiles), i innermost.
# -----------------------------------------------------------------------------
def _conv_kernel(a_ref, b_ref, o_ref):
    o_ref[...] = jnp.dot(a_ref[...], b_ref[...],
                         preferred_element_type=jnp.float32).astype(o_ref.dtype)


def _conv_bias_kernel(a_ref, b_ref, bias_ref, o_ref):
    acc = jnp.dot(a_ref[...], b_ref[...], preferred_element_type=jnp.float32)
    o_ref[...] = (acc + bias_ref[...]).astype(o_ref.dtype)


def _conv_stats_kernel(a_ref, b_ref, o_ref, sum_ref, sumsq_ref):
    """Matmul tile + fused per-channel sum / sumsq (BN batch stats).

    sum/sumsq blocks are indexed (0, j): they stay resident across the inner
    ("arbitrary") M axis and are flushed when the Cout tile changes.  Padded M
    rows are exactly zero (zero patches, no bias) so no masking is needed.
    """
    i = pl.program_id(1)
    acc = jnp.dot(a_ref[...], b_ref[...], preferred_element_type=jnp.float32)
    ob = acc.astype(o_ref.dtype)                 # bf16 intermediate
    o_ref[...] = ob
    x = ob.astype(jnp.float32)                   # stats over what apply() will see

    @pl.when(i == 0)
    def _():
        sum_ref[...] = jnp.zeros_like(sum_ref)
        sumsq_ref[...] = jnp.zeros_like(sumsq_ref)

    sum_ref[...] += jnp.sum(x, axis=0, keepdims=True)
    sumsq_ref[...] += jnp.sum(x * x, axis=0, keepdims=True)


def _pallas_conv(a, b, bias, *, tm, tn, emit_stats):
    Mp, Kp = a.shape
    _, Np = b.shape
    gi, gj = Mp // tm, Np // tn
    a_spec = pl.BlockSpec((tm, Kp), lambda j, i: (i, 0))
    b_spec = pl.BlockSpec((Kp, tn), lambda j, i: (0, j))
    o_spec = pl.BlockSpec((tm, tn), lambda j, i: (i, j))
    row_spec = pl.BlockSpec((1, tn), lambda j, i: (0, j))
    cparams = pltpu.CompilerParams(
        dimension_semantics=("parallel", "arbitrary" if emit_stats else "parallel"),
        vmem_limit_bytes=_VMEM_LIMIT)

    if emit_stats:
        return pl.pallas_call(
            _conv_stats_kernel,
            out_shape=(jax.ShapeDtypeStruct((Mp, Np), jnp.bfloat16),
                       jax.ShapeDtypeStruct((1, Np), jnp.float32),
                       jax.ShapeDtypeStruct((1, Np), jnp.float32)),
            grid_spec=pltpu.PrefetchScalarGridSpec(
                num_scalar_prefetch=0, grid=(gj, gi),
                in_specs=[a_spec, b_spec],
                out_specs=(o_spec, row_spec, row_spec)),
            compiler_params=cparams,
        )(a, b)

    if bias is not None:
        return pl.pallas_call(
            _conv_bias_kernel,
            out_shape=jax.ShapeDtypeStruct((Mp, Np), jnp.float32),
            grid_spec=pltpu.PrefetchScalarGridSpec(
                num_scalar_prefetch=0, grid=(gj, gi),
                in_specs=[a_spec, b_spec, row_spec],
                out_specs=o_spec),
            compiler_params=cparams,
        )(a, b, bias)

    return pl.pallas_call(
        _conv_kernel,
        out_shape=jax.ShapeDtypeStruct((Mp, Np), jnp.float32),
        grid_spec=pltpu.PrefetchScalarGridSpec(
            num_scalar_prefetch=0, grid=(gj, gi),
            in_specs=[a_spec, b_spec],
            out_specs=o_spec),
        compiler_params=cparams,
    )(a, b)


# -----------------------------------------------------------------------------
# BN apply + PReLU (pure HBM streaming pass, bf16 in / f32 out).
# scale/shift are precomputed outside from the fused sum/sumsq.
# -----------------------------------------------------------------------------
def _bn_prelu_kernel(x_ref, scale_ref, shift_ref, alpha_ref, o_ref):
    y = x_ref[...].astype(jnp.float32) * scale_ref[...] + shift_ref[...]
    o_ref[...] = jnp.where(y >= 0.0, y, alpha_ref[...] * y)


def _pallas_bn_prelu_apply(x, scale, shift, alpha, *, tr):
    Mp, Np = x.shape
    row_spec = pl.BlockSpec((1, Np), lambda i: (0, 0))
    return pl.pallas_call(
        _bn_prelu_kernel,
        out_shape=jax.ShapeDtypeStruct((Mp, Np), jnp.float32),
        grid_spec=pltpu.PrefetchScalarGridSpec(
            num_scalar_prefetch=0, grid=(Mp // tr,),
            in_specs=[pl.BlockSpec((tr, Np), lambda i: (i, 0)),
                      row_spec, row_spec, row_spec],
            out_specs=pl.BlockSpec((tr, Np), lambda i: (i, 0))),
        compiler_params=pltpu.CompilerParams(
            dimension_semantics=("parallel",),
            vmem_limit_bytes=_VMEM_LIMIT),
    )(x, scale, shift, alpha)


# -----------------------------------------------------------------------------
# Layout-preserving im2col (plain JAX plumbing, no full-tensor transpose).
# -----------------------------------------------------------------------------
def _im2col_nhwc(x_nhwc, kh, kw, sh, sw, ph, pw, dh, dw):
    N, H, W, C = x_nhwc.shape
    Ho = (H + 2 * ph - dh * (kh - 1) - 1) // sh + 1
    Wo = (W + 2 * pw - dw * (kw - 1) - 1) // sw + 1
    if kh == kw == 1 and ph == pw == 0 and sh == sw == 1 and dh == dw == 1:
        return x_nhwc.reshape(N * H * W, C), Ho, Wo
    xp = jnp.pad(x_nhwc, ((0, 0), (ph, ph), (pw, pw), (0, 0)))
    slabs = []
    for ki in range(kh):
        for kj in range(kw):
            slabs.append(lax.slice(
                xp,
                (0, ki * dh, kj * dw, 0),
                (N, ki * dh + (Ho - 1) * sh + 1, kj * dw + (Wo - 1) * sw + 1, C),
                (1, sh, sw, 1)))                          # (N, Ho, Wo, C)
    patches = slabs[0] if len(slabs) == 1 else jnp.concatenate(slabs, axis=-1)
    return patches.reshape(N * Ho * Wo, kh * kw * C), Ho, Wo


# -----------------------------------------------------------------------------
# Generation-aware tile selection.
# -----------------------------------------------------------------------------
def _pick_matmul_tiles(M, Kp, Np, out_bytes):
    """tn multiple of 256 when possible (256x256 MXU on v6e/v7x), tm multiple of
    16 (bf16 sublane pack), >=2 M tiles for small M (v7x megacore), and a
    double-buffered working set <= 12 MiB (fits v5e's default scoped VMEM)."""
    tn = 256 if Np % 256 == 0 else 128
    if M >= 1024:
        tm = 512
    elif M >= 512:
        tm = 256
    elif M >= 32:
        tm = _round_up(-(-M // 2), 16)        # two tiles
    else:
        tm = _round_up(M, 16)

    def ws(tm_, tn_):                          # double-buffered A, B, out blocks
        return 2 * (tm_ * Kp * 2 + Kp * tn_ * 2 + tm_ * tn_ * out_bytes)

    while tm > 128 and ws(tm, tn) > _MATMUL_VMEM_BUDGET:
        tm //= 2
    while tn > 128 and ws(tm, tn) > _MATMUL_VMEM_BUDGET:
        tn //= 2
    # TODO(synk): for very large K (Cin*kh*kw >~ 4096) add a K grid axis +
    # f32 accumulator scratch instead of shrinking tm/tn further.
    return tm, tn


def _pick_apply_rows(Mp, tm, Np):
    """Row tile for the streaming BN+PReLU pass: as large as the budget allows,
    a multiple of the matmul tm (so Mp divides evenly), >=2 blocks if possible."""
    nblk = Mp // tm
    per_row = 2 * (2 + 4) * Np                 # bf16 in + f32 out, double-buffered
    max_rows = max(tm, _APPLY_VMEM_BUDGET // per_row)
    for g in range(nblk, 0, -1):
        if nblk % g == 0 and g * tm <= max_rows and (nblk // g >= 2 or nblk == 1):
            return g * tm
    return tm


# -----------------------------------------------------------------------------
# The Conv module (Conv2d [+ BN(train-mode batch stats) + PReLU]).
# -----------------------------------------------------------------------------
class ConvPallas:
    def __init__(self, nIn, nOut, kSize, stride, padding, dilation=(1, 1),
                 groups=1, bn_acti=False, bias=False, *, key):
        if groups != 1:
            # TODO(synk): grouped conv (groups != 1) not implemented (module default is 1).
            raise NotImplementedError("groups != 1 not supported")
        as2 = lambda v: (v, v) if isinstance(v, int) else tuple(v)
        self.kh, self.kw = as2(kSize)
        self.sh, self.sw = as2(stride)
        self.ph, self.pw = as2(padding)
        self.dh, self.dw = as2(dilation)
        self.nIn, self.nOut = nIn, nOut
        self.bn_acti = bn_acti
        self.use_bias = bias
        self.eps = 1e-3

        kw_, kb_ = jax.random.split(key)
        fan_in = nIn * self.kh * self.kw
        bound = 1.0 / float(fan_in) ** 0.5
        # deterministic synthetic init (matches PyTorch Conv2d default ranges)
        self.weight = jax.random.uniform(
            kw_, (nOut, nIn, self.kh, self.kw), jnp.float32, -bound, bound)
        self.bias = (jax.random.uniform(kb_, (nOut,), jnp.float32, -bound, bound)
                     if bias else None)
        # BatchNorm2d(eps=1e-3) defaults: gamma=1, beta=0 ; PReLU(nOut): slope=0.25
        self.gamma = jnp.ones((nOut,), jnp.float32)
        self.beta = jnp.zeros((nOut,), jnp.float32)
        self.alpha = jnp.full((nOut,), 0.25, jnp.float32)

        self._forward = jax.jit(self._forward_impl)

    def _forward_impl(self, x):
        N, C, H, W = x.shape
        assert C == self.nIn

        # NCHW -> NHWC once (channels on lanes); bf16 operands for the MXU.
        x_nhwc = jnp.transpose(x, (0, 2, 3, 1)).astype(jnp.bfloat16)
        patches, Ho, Wo = _im2col_nhwc(x_nhwc, self.kh, self.kw, self.sh, self.sw,
                                       self.ph, self.pw, self.dh, self.dw)
        M, K = patches.shape
        Kp = _round_up(K, 128)
        Np = _round_up(self.nOut, 128)
        out_bytes = 2 if self.bn_acti else 4
        tm, tn = _pick_matmul_tiles(M, Kp, Np, out_bytes)
        Mp = _round_up(M, tm)
        if (Mp, Kp) != (M, K):
            patches = jnp.pad(patches, ((0, Mp - M), (0, Kp - K)))

        # weight (Cout,Cin,kh,kw) -> (kh,kw,Cin,Cout) -> (K,Cout); pad to (Kp,Np).
        w2d = jnp.transpose(self.weight, (2, 3, 1, 0)).reshape(K, self.nOut)
        w2d = jnp.pad(w2d, ((0, Kp - K), (0, Np - self.nOut))).astype(jnp.bfloat16)

        if self.bn_acti:
            # conv matmul with fused per-channel sum/sumsq, bf16 intermediate.
            # (a conv bias is a no-op under training-mode batch norm -> dropped)
            out2d, sum_c, sumsq_c = _pallas_conv(patches, w2d, None,
                                                 tm=tm, tn=tn, emit_stats=True)
            inv_m = 1.0 / float(M)               # padded rows are exactly zero
            mean = sum_c * inv_m
            var = jnp.maximum(sumsq_c * inv_m - mean * mean, 0.0)   # clamp cancellation
            inv_std = lax.rsqrt(var + self.eps)
            gamma = jnp.pad(self.gamma, (0, Np - self.nOut),
                            constant_values=1.0).reshape(1, Np)
            beta = jnp.pad(self.beta, (0, Np - self.nOut)).reshape(1, Np)
            alpha = jnp.pad(self.alpha, (0, Np - self.nOut)).reshape(1, Np)
            scale = gamma * inv_std
            shift = beta - mean * scale
            tr = _pick_apply_rows(Mp, tm, Np)
            out2d = _pallas_bn_prelu_apply(out2d, scale, shift, alpha, tr=tr)
        else:
            bias_row = None
            if self.use_bias:
                bias_row = jnp.pad(self.bias, (0, Np - self.nOut)).reshape(1, Np)
            out2d = _pallas_conv(patches, w2d, bias_row, tm=tm, tn=tn,
                                 emit_stats=False)

        out2d = out2d[:M, :self.nOut]
        return out2d.reshape(N, Ho, Wo, self.nOut).transpose(0, 3, 1, 2)

    def __call__(self, x):
        return self._forward(x)


# -----------------------------------------------------------------------------
if __name__ == "__main__":
    key = jax.random.PRNGKey(0)
    kx, kp1, kp2 = jax.random.split(key, 3)

    N, Cin, H, W = 2, 4, 16, 16
    Cout, kSize, stride, padding = 8, 3, 1, 1
    x = jax.random.normal(kx, (N, Cin, H, W), jnp.float32)

    # --- path 1: conv + BN + PReLU (bn_acti=True, bias=False; fbsnet default) ---
    conv_bn = ConvPallas(Cin, Cout, kSize, stride, padding, dilation=(1, 1),
                         groups=1, bn_acti=True, bias=False, key=kp1)
    out_bn = conv_bn(x)
    jax.block_until_ready(out_bn)

    # pure-JAX reference.  The kernel keeps its conv intermediate in bf16 (with
    # f32 accumulation), so the reference rounds through bf16 as well; residual
    # differences are accumulation/rounding-order only -> 1e-2 tolerance.
    ref = lax.conv_general_dilated(
        x.astype(jnp.bfloat16), conv_bn.weight.astype(jnp.bfloat16),
        window_strides=(stride, stride),
        padding=[(padding, padding), (padding, padding)],
        rhs_dilation=(1, 1), dimension_numbers=("NCHW", "OIHW", "NCHW"),
        preferred_element_type=jnp.float32)
    ref = ref.astype(jnp.bfloat16).astype(jnp.float32)
    mean = ref.mean(axis=(0, 2, 3), keepdims=True)
    var = ref.var(axis=(0, 2, 3), keepdims=True)
    y = (ref - mean) / jnp.sqrt(var + conv_bn.eps)
    y = y * conv_bn.gamma[None, :, None, None] + conv_bn.beta[None, :, None, None]
    ref_bn = jnp.where(y >= 0.0, y, conv_bn.alpha[None, :, None, None] * y)

    assert out_bn.shape == (N, Cout, H, W), out_bn.shape
    assert jnp.allclose(out_bn, ref_bn, atol=1e-2, rtol=1e-2), \
        float(jnp.max(jnp.abs(out_bn - ref_bn)))

    # --- path 2: plain strided conv with bias (bn_acti=False, bias=True) ---
    conv_b = ConvPallas(Cin, Cout, kSize, 2, padding, dilation=(1, 1),
                        groups=1, bn_acti=False, bias=True, key=kp2)
    out_b = conv_b(x)
    jax.block_until_ready(out_b)
    ref_b = lax.conv_general_dilated(
        x.astype(jnp.bfloat16), conv_b.weight.astype(jnp.bfloat16),
        window_strides=(2, 2),
        padding=[(padding, padding), (padding, padding)],
        rhs_dilation=(1, 1), dimension_numbers=("NCHW", "OIHW", "NCHW"),
        preferred_element_type=jnp.float32) + conv_b.bias[None, :, None, None]
    assert out_b.shape == ref_b.shape, (out_b.shape, ref_b.shape)
    assert jnp.allclose(out_b, ref_b, atol=2e-3, rtol=2e-3), \
        float(jnp.max(jnp.abs(out_b - ref_b)))

    print("KERNEL_OK")
</pallas_src>

<mosaic_0001>
module attributes {stable_mosaic.version = 11 : i64} {
  func.func @_conv_stats_kernel(%arg0: i32, %arg1: i32, %arg2: memref<256x128xbf16, #tpu.memory_space<vmem>>, %arg3: memref<128x128xbf16, #tpu.memory_space<vmem>>, %arg4: memref<256x128xbf16, #tpu.memory_space<vmem>>, %arg5: memref<1x128xf32, #tpu.memory_space<vmem>>, %arg6: memref<1x128xf32, #tpu.memory_space<vmem>>) attributes {dimension_semantics = [#tpu.dimension_semantics<parallel>, #tpu.dimension_semantics<arbitrary>], iteration_bounds = array<i64: 1, 2>, scalar_prefetch = 0 : i64, scratch_operands = 0 : i64, tpu.core_type = #tpu.core_type<tc>, window_params = [{transform_indices = @transform_0, window_bounds = array<i64: 256, 128>}, {transform_indices = @transform_1, window_bounds = array<i64: 128, 128>}, {transform_indices = @transform_2, window_bounds = array<i64: 256, 128>}, {transform_indices = @transform_3, window_bounds = array<i64: 1, 128>}, {transform_indices = @transform_4, window_bounds = array<i64: 1, 128>}]} {
    %c0 = arith.constant 0 : index
    %c0_0 = arith.constant 0 : index
    %0 = vector.load %arg2[%c0, %c0_0] : memref<256x128xbf16, #tpu.memory_space<vmem>>, vector<256x128xbf16>
    %c0_1 = arith.constant 0 : index
    %c0_2 = arith.constant 0 : index
    %1 = vector.load %arg3[%c0_1, %c0_2] : memref<128x128xbf16, #tpu.memory_space<vmem>>, vector<128x128xbf16>
    %cst = arith.constant dense<0.000000e+00> : vector<256x128xf32>
    %2 = tpu.matmul %0, %1, %cst {dimension_numbers = #tpu.dot_dimension_numbers<[1], [0], [0], [1], [0, 0, 1, 1], [], []>} : vector<256x128xbf16>, vector<128x128xbf16>, vector<256x128xf32> -> vector<256x128xf32>
    %3 = arith.truncf %2 : vector<256x128xf32> to vector<256x128xbf16>
    %c0_3 = arith.constant 0 : index
    %c0_4 = arith.constant 0 : index
    %4 = vector.load %arg4[%c0_3, %c0_4] : memref<256x128xbf16, #tpu.memory_space<vmem>>, vector<256x128xbf16>
    tpu.vector_store %arg4[%c0_3, %c0_4], %3 {strides = array<i32>} : memref<256x128xbf16, #tpu.memory_space<vmem>>, vector<256x128xbf16>,
    %5 = arith.extf %3 : vector<256x128xbf16> to vector<256x128xf32>
    %c0_i32 = arith.constant 0 : i32
    %6 = arith.cmpi eq, %arg1, %c0_i32 : i32
    %7 = arith.extui %6 : i1 to i32
    %c0_i32_5 = arith.constant 0 : i32
    %8 = arith.cmpi ne, %7, %c0_i32_5 : i32
    scf.if %8 {
      %cst_16 = arith.constant 0.000000e+00 : f32
      %20 = vector.broadcast %cst_16 : f32 to vector<1x128xf32>
      %c0_17 = arith.constant 0 : index
      %c0_18 = arith.constant 0 : index
      %21 = vector.load %arg5[%c0_17, %c0_18] : memref<1x128xf32, #tpu.memory_space<vmem>>, vector<1x128xf32>
      tpu.vector_store %arg5[%c0_17, %c0_18], %20 {strides = array<i32>} : memref<1x128xf32, #tpu.memory_space<vmem>>, vector<1x128xf32>,
      %cst_19 = arith.constant 0.000000e+00 : f32
      %22 = vector.broadcast %cst_19 : f32 to vector<1x128xf32>
      %c0_20 = arith.constant 0 : index
      %c0_21 = arith.constant 0 : index
      %23 = vector.load %arg6[%c0_20, %c0_21] : memref<1x128xf32, #tpu.memory_space<vmem>>, vector<1x128xf32>
      tpu.vector_store %arg6[%c0_20, %c0_21], %22 {strides = array<i32>} : memref<1x128xf32, #tpu.memory_space<vmem>>, vector<1x128xf32>,
    } else {
    }
    %c0_6 = arith.constant 0 : index
    %c0_7 = arith.constant 0 : index
    %9 = vector.load %arg5[%c0_6, %c0_7] : memref<1x128xf32, #tpu.memory_space<vmem>>, vector<1x128xf32>
    %cst_8 = arith.constant dense<0.000000e+00> : vector<128xf32>
    %10 = vector.multi_reduction <add>, %5, %cst_8 [0] : vector<256x128xf32> to vector<128xf32>
    %11 = vector.shape_cast %10 : vector<128xf32> to vector<1x128xf32>
    %12 = arith.addf %9, %11 : vector<1x128xf32>
    %c0_9 = arith.constant 0 : index
    %c0_10 = arith.constant 0 : index
    %13 = vector.load %arg5[%c0_9, %c0_10] : memref<1x128xf32, #tpu.memory_space<vmem>>, vector<1x128xf32>
    tpu.vector_store %arg5[%c0_9, %c0_10], %12 {strides = array<i32>} : memref<1x128xf32, #tpu.memory_space<vmem>>, vector<1x128xf32>,
    %c0_11 = arith.constant 0 : index
    %c0_12 = arith.constant 0 : index
    %14 = vector.load %arg6[%c0_11, %c0_12] : memref<1x128xf32, #tpu.memory_space<vmem>>, vector<1x128xf32>
    %15 = arith.mulf %5, %5 : vector<256x128xf32>
    %cst_13 = arith.constant dense<0.000000e+00> : vector<128xf32>
    %16 = vector.multi_reduction <add>, %15, %cst_13 [0] : vector<256x128xf32> to vector<128xf32>
    %17 = vector.shape_cast %16 : vector<128xf32> to vector<1x128xf32>
    %18 = arith.addf %14, %17 : vector<1x128xf32>
    %c0_14 = arith.constant 0 : index
    %c0_15 = arith.constant 0 : index
    %19 = vector.load %arg6[%c0_14, %c0_15] : memref<1x128xf32, #tpu.memory_space<vmem>>, vector<1x128xf32>
    tpu.vector_store %arg6[%c0_14, %c0_15], %18 {strides = array<i32>} : memref<1x128xf32, #tpu.memory_space<vmem>>, vector<1x128xf32>,
    return
  }
  func.func @transform_0(%arg0: i32, %arg1: i32) -> (i32, i32) {
    %c0_i32 = arith.constant 0 : i32
    %c0_i32_0 = arith.constant 0 : i32
    return %arg1, %c0_i32 : i32, i32
  }
  func.func @transform_1(%arg0: i32, %arg1: i32) -> (i32, i32) {
    %c0_i32 = arith.constant 0 : i32
    %c0_i32_0 = arith.constant 0 : i32
    return %c0_i32, %arg0 : i32, i32
  }
  func.func @transform_2(%arg0: i32, %arg1: i32) -> (i32, i32) {
    %c0_i32 = arith.constant 0 : i32
    return %arg1, %arg0 : i32, i32
  }
  func.func @transform_3(%arg0: i32, %arg1: i32) -> (i32, i32) {
    %c0_i32 = arith.constant 0 : i32
    %c0_i32_0 = arith.constant 0 : i32
    return %c0_i32, %arg0 : i32, i32
  }
  func.func @transform_4(%arg0: i32, %arg1: i32) -> (i32, i32) {
    %c0_i32 = arith.constant 0 : i32
    %c0_i32_0 = arith.constant 0 : i32
    return %c0_i32, %arg0 : i32, i32
  }
}

module attributes {stable_mosaic.version = 11 : i64} {
  func.func @_bn_prelu_kernel(%arg0: i32, %arg1: memref<256x128xbf16, #tpu.memory_space<vmem>>, %arg2: memref<1x128xf32, #tpu.memory_space<vmem>>, %arg3: memref<1x128xf32, #tpu.memory_space<vmem>>, %arg4: memref<1x128xf32, #tpu.memory_space<vmem>>, %arg5: memref<256x128xf32, #tpu.memory_space<vmem>>) attributes {dimension_semantics = [#tpu.dimension_semantics<parallel>], iteration_bounds = array<i64: 2>, scalar_prefetch = 0 : i64, scratch_operands = 0 : i64, tpu.core_type = #tpu.core_type<tc>, window_params = [{transform_indices = @transform_0, window_bounds = array<i64: 256, 128>}, {pipeline_mode = #tpu.pipeline_mode<synchronous>, transform_indices = @transform_1, window_bounds = array<i64: 1, 128>}, {pipeline_mode = #tpu.pipeline_mode<synchronous>, transform_indices = @transform_2, window_bounds = array<i64: 1, 128>}, {pipeline_mode = #tpu.pipeline_mode<synchronous>, transform_indices = @transform_3, window_bounds = array<i64: 1, 128>}, {transform_indices = @transform_4, window_bounds = array<i64: 256, 128>}]} {
    %c0 = arith.constant 0 : index
    %c0_0 = arith.constant 0 : index
    %0 = vector.load %arg1[%c0, %c0_0] : memref<256x128xbf16, #tpu.memory_space<vmem>>, vector<256x128xbf16>
    %1 = arith.extf %0 : vector<256x128xbf16> to vector<256x128xf32>
    %c0_1 = arith.constant 0 : index
    %c0_2 = arith.constant 0 : index
    %2 = vector.load %arg2[%c0_1, %c0_2] : memref<1x128xf32, #tpu.memory_space<vmem>>, vector<1x128xf32>
    %3 = vector.broadcast %2 : vector<1x128xf32> to vector<256x128xf32>
    %4 = arith.mulf %1, %3 : vector<256x128xf32>
    %c0_3 = arith.constant 0 : index
    %c0_4 = arith.constant 0 : index
    %5 = vector.load %arg3[%c0_3, %c0_4] : memref<1x128xf32, #tpu.memory_space<vmem>>, vector<1x128xf32>
    %6 = vector.broadcast %5 : vector<1x128xf32> to vector<256x128xf32>
    %7 = arith.addf %4, %6 : vector<256x128xf32>
    %cst = arith.constant 0.000000e+00 : f32
    %8 = vector.broadcast %cst : f32 to vector<256x128xf32>
    %9 = arith.cmpf oge, %7, %8 : vector<256x128xf32>
    %c0_5 = arith.constant 0 : index
    %c0_6 = arith.constant 0 : index
    %10 = vector.load %arg4[%c0_5, %c0_6] : memref<1x128xf32, #tpu.memory_space<vmem>>, vector<1x128xf32>
    %11 = vector.broadcast %10 : vector<1x128xf32> to vector<256x128xf32>
    %12 = arith.mulf %11, %7 : vector<256x128xf32>
    %13 = arith.select %9, %7, %12 : vector<256x128xi1>, vector<256x128xf32>
    %c0_7 = arith.constant 0 : index
    %c0_8 = arith.constant 0 : index
    %14 = vector.load %arg5[%c0_7, %c0_8] : memref<256x128xf32, #tpu.memory_space<vmem>>, vector<256x128xf32>
    tpu.vector_store %arg5[%c0_7, %c0_8], %13 {strides = array<i32>} : memref<256x128xf32, #tpu.memory_space<vmem>>, vector<256x128xf32>,
    return
  }
  func.func @transform_0(%arg0: i32) -> (i32, i32) {
    %c0_i32 = arith.constant 0 : i32
    %c0_i32_0 = arith.constant 0 : i32
    return %arg0, %c0_i32 : i32, i32
  }
  func.func @transform_1(%arg0: i32) -> (i32, i32) {
    %c0_i32 = arith.constant 0 : i32
    %c0_i32_0 = arith.constant 0 : i32
    %c0_i32_1 = arith.constant 0 : i32
    return %c0_i32, %c0_i32_0 : i32, i32
  }
  func.func @transform_2(%arg0: i32) -> (i32, i32) {
    %c0_i32 = arith.constant 0 : i32
    %c0_i32_0 = arith.constant 0 : i32
    %c0_i32_1 = arith.constant 0 : i32
    return %c0_i32, %c0_i32_0 : i32, i32
  }
  func.func @transform_3(%arg0: i32) -> (i32, i32) {
    %c0_i32 = arith.constant 0 : i32
    %c0_i32_0 = arith.constant 0 : i32
    %c0_i32_1 = arith.constant 0 : i32
    return %c0_i32, %c0_i32_0 : i32, i32
  }
  func.func @transform_4(%arg0: i32) -> (i32, i32) {
    %c0_i32 = arith.constant 0 : i32
    %c0_i32_0 = arith.constant 0 : i32
    return %arg0, %c0_i32 : i32, i32
  }
}

</mosaic_0001>

<bundles_post_ra>
// kernel: _forward_impl.3
= control target key start
LH: loop header
LB: loop body
LE: loop exit
PB: predicated region body
PF: predicated region fallthrough
CT: control target
= control target key end

     0   :  { %s659_s15 = smov 0   ;;  %s843_s0 = inlined_call_operand.vmem [shape: bf16[512,128], index: 0, kind: input, shape index: {}]   ;;  %s844_s1 = inlined_call_operand.vmem [shape: f32[1,128], index: 1, kind: input, shape index: {}]   ;;  %s845_s2 = inlined_call_operand.vmem [shape: f32[1,128], index: 2, kind: input, shape index: {}]   ;;  %s846_s3 = inlined_call_operand.vmem [shape: f32[1,128], index: 3, kind: input, shape index: {}]   ;;  %s847_s4 = inlined_call_operand.vmem [shape: f32[512,128], index: 4, kind: output, shape index: {}]  }
   0x1 LB: > { %s525_s16 = sadd.s32 4294967295, %s632_s15   ;;  %p529_p0 = scmp.ge.s32.totalorder %s632_s15, 1  ;;  %s632_s15 = sphi %s659_s15, %s14_s15  }
   0x2   : > { %p163_p1 = scmp.lt.s32.totalorder %s632_s15, 3 }
   0x4   : > { %p164_p2 = pnand %p529_p0, %p163_p1 }
   0x5   : > { %s530_s17 = sshll.u32 (!%p164_p2), %s525_s16, 5 }
   0x6   : > { %167 = sbr.rel (%p164_p2) target bundleno = 69 (0x45), region = 36  ;;  %p190_p3 = scmp.lt.s32.totalorder (!%p164_p2), %s530_s17, 63 }
   0xb   : > { %s849_s17 = smov (!%p190_p3, %s530_s17), 63  ;;  %v678_v0 = vld [vmem:[%s844_s1] ss:$0 sm:$0xff] }
   0xc   : > { %s531_s18 = sshll.u32 %s849_s17, 2  ;;  %v686_v5 = vld [vmem:[%s845_s2] ss:$0 sm:$0xff]  ;;  %s533_s28 = sshll.u32 %s849_s17, 3 }
   0xd   : > { %s673_s21 = scalar_lea.vmem %s843_s0, %s531_s18  ;;  %v693_v15 = vld [vmem:[%s846_s3] ss:$0 sm:$0xff]  ;;  %s714_s5 = scalar_lea.vmem %s847_s4, %s533_s28 }
   0xe   : > { %v537_v1 = vld [vmem:[%s673_s21] sm:$0xff]   ;;  %v600_v2 = vld [vmem:[%s673_s21 + $0x8] sm:$0xff]   ;;  %v601_v3 = vld [vmem:[%s673_s21 + $0x10] sm:$0xff]  }
   0xf   : > { %v538_v4 = vunpack.c.l.bf16 %v537_v1  ;;  %v539_v6 = vunpack.c.h.bf16 %v537_v1  ;;  %v542_v7 = vunpack.c.l.bf16 %v600_v2  ;;  %v543_v8 = vunpack.c.h.bf16 %v600_v2  ;;  %v602_v9 = vld [vmem:[%s673_s21 + $0x18] sm:$0xff]   ;;  %v603_v38 = vld [vmem:[%s673_s21 + $0x20] sm:$0xff]   ;;  %v604_v42 = vld [vmem:[%s673_s21 + $0x28] sm:$0xff]  }
  0x10   : > { %v546_v10 = vunpack.c.l.bf16 %v601_v3  ;;  %v547_v11 = vunpack.c.h.bf16 %v601_v3  ;;  %v550_v12 = vunpack.c.l.bf16 %v602_v9  ;;  %v551_v13 = vunpack.c.h.bf16 %v602_v9  ;;  %v605_v43 = vld [vmem:[%s673_s21 + $0x30] sm:$0xff]   ;;  %v606_v50 = vld [vmem:[%s673_s21 + $0x38] sm:$0xff]  }
  0x11   : > { %v269_v14 = vmul.f32 %v678_v0, %v538_v4  ;;  %v270_v16 = vmul.f32 %v678_v0, %v539_v6  ;;  %v271_v17 = vmul.f32 %v678_v0, %v542_v7  ;;  %v272_v18 = vmul.f32 %v678_v0, %v543_v8 }
  0x12   : > { %v273_v19 = vmul.f32 %v678_v0, %v546_v10  ;;  %v274_v20 = vmul.f32 %v678_v0, %v547_v11  ;;  %v275_v21 = vmul.f32 %v678_v0, %v550_v12  ;;  %v276_v22 = vmul.f32 %v678_v0, %v551_v13  ;;  %v607_v13 = vld [vmem:[%s673_s21 + $0x40] sm:$0xff]  }
  0x13   : > { %v305_v23 = vadd.f32 %v686_v5, %v269_v14  ;;  %v306_v24 = vadd.f32 %v686_v5, %v270_v16  ;;  %v307_v25 = vadd.f32 %v686_v5, %v271_v17  ;;  %v308_v26 = vadd.f32 %v686_v5, %v272_v18 }
  0x14   : > { %v309_v27 = vadd.f32 %v686_v5, %v273_v19  ;;  %v310_v28 = vadd.f32 %v686_v5, %v274_v20  ;;  %v311_v29 = vadd.f32 %v686_v5, %v275_v21  ;;  %v312_v30 = vadd.f32 %v686_v5, %v276_v22  ;;  %v608_v22 = vld [vmem:[%s673_s21 + $0x48] sm:$0xff]  }
  0x15   : > { %vm337_vm0 = vcmp.ge.f32.partialorder %v305_v23, 0.0  ;;  %v373_v31 = vmul.f32 %v693_v15, %v305_v23  ;;  %vm338_vm1 = vcmp.ge.f32.partialorder %v306_v24, 0.0  ;;  %v374_v32 = vmul.f32 %v693_v15, %v306_v24 }
  0x16   : > { %vm339_vm2 = vcmp.ge.f32.partialorder %v307_v25, 0.0  ;;  %v375_v33 = vmul.f32 %v693_v15, %v307_v25  ;;  %vm340_vm3 = vcmp.ge.f32.partialorder %v308_v26, 0.0  ;;  %v376_v34 = vmul.f32 %v693_v15, %v308_v26 }
  0x17   : > { %v405_v35 = vsel %vm337_vm0, %v305_v23, %v373_v31  ;;  %v406_v36 = vsel %vm338_vm1, %v306_v24, %v374_v32  ;;  %vm341_vm4 = vcmp.ge.f32.partialorder %v309_v27, 0.0  ;;  %v377_v37 = vmul.f32 %v693_v15, %v309_v27 }
  0x18   : > { %437 = vst [vmem:[%s714_s5] sm:$0xff] %v405_v35  ;;  %v407_v39 = vsel %vm339_vm2, %v307_v25, %v375_v33  ;;  %v408_v40 = vsel %vm340_vm3, %v308_v26, %v376_v34  ;;  %vm342_vm5 = vcmp.ge.f32.partialorder %v310_v28, 0.0  ;;  %v378_v41 = vmul.f32 %v693_v15, %v310_v28 }
  0x19   : > { %438 = vst [vmem:[%s714_s5 + $0x8] sm:$0xff] %v406_v36  ;;  %v409_v44 = vsel %vm341_vm4, %v309_v27, %v377_v37  ;;  %vm343_vm6 = vcmp.ge.f32.partialorder %v311_v29, 0.0  ;;  %v379_v45 = vmul.f32 %v693_v15, %v311_v29  ;;  %vm344_vm7 = vcmp.ge.f32.partialorder %v312_v30, 0.0  ;;  %v609_v27 = vld [vmem:[%s673_s21 + $0x50] sm:$0xff]  }
  0x1a   : > { %439 = vst [vmem:[%s714_s5 + $0x10] sm:$0xff] %v407_v39  ;;  %v410_v46 = vsel %vm342_vm5, %v310_v28, %v378_v41  ;;  %v380_v47 = vmul.f32 %v693_v15, %v312_v30  ;;  %v554_v48 = vunpack.c.l.bf16 %v603_v38  ;;  %v555_v49 = vunpack.c.h.bf16 %v603_v38 }
  0x1b   : > { %440 = vst [vmem:[%s714_s5 + $0x18] sm:$0xff] %v408_v40  ;;  %v411_v51 = vsel %vm343_vm6, %v311_v29, %v379_v45  ;;  %v558_v52 = vunpack.c.l.bf16 %v604_v42  ;;  %v559_v53 = vunpack.c.h.bf16 %v604_v42  ;;  %v562_v54 = vunpack.c.l.bf16 %v605_v43  ;;  %v610_v45 = vld [vmem:[%s673_s21 + $0x58] sm:$0xff]  }
  0x1c   : > { %441 = vst [vmem:[%s714_s5 + $0x20] sm:$0xff] %v409_v44  ;;  %v412_v55 = vsel %vm344_vm7, %v312_v30, %v380_v47  ;;  %v277_v56 = vmul.f32 %v678_v0, %v554_v48  ;;  %v278_v57 = vmul.f32 %v678_v0, %v555_v49  ;;  %v563_v58 = vunpack.c.h.bf16 %v605_v43 }
  0x1d   : > { %442 = vst [vmem:[%s714_s5 + $0x28] sm:$0xff] %v410_v46  ;;  %v279_v59 = vmul.f32 %v678_v0, %v558_v52  ;;  %v280_v60 = vmul.f32 %v678_v0, %v559_v53  ;;  %v281_v61 = vmul.f32 %v678_v0, %v562_v54  ;;  %v566_v62 = vunpack.c.l.bf16 %v606_v50 }
  0x1e   : > { %443 = vst [vmem:[%s714_s5 + $0x30] sm:$0xff] %v411_v51  ;;  %v313_v63 = vadd.f32 %v686_v5, %v277_v56  ;;  %v314_v1 = vadd.f32 %v686_v5, %v278_v57  ;;  %v282_v2 = vmul.f32 %v678_v0, %v563_v58  ;;  %v567_v3 = vunpack.c.h.bf16 %v606_v50  ;;  %v611_v56 = vld [vmem:[%s673_s21 + $0x60] sm:$0xff]  }
  0x1f   : > { %444 = vst [vmem:[%s714_s5 + $0x38] sm:$0xff] %v412_v55  ;;  %v315_v4 = vadd.f32 %v686_v5, %v279_v59  ;;  %v316_v6 = vadd.f32 %v686_v5, %v280_v60  ;;  %v317_v7 = vadd.f32 %v686_v5, %v281_v61  ;;  %v283_v8 = vmul.f32 %v678_v0, %v566_v62 }
  0x20   : > { %vm345_vm8 = vcmp.ge.f32.partialorder %v313_v63, 0.0  ;;  %v381_v9 = vmul.f32 %v693_v15, %v313_v63  ;;  %vm346_vm9 = vcmp.ge.f32.partialorder %v314_v1, 0.0  ;;  %v382_v10 = vmul.f32 %v693_v15, %v314_v1 }
  0x21   : > { %vm347_vm10 = vcmp.ge.f32.partialorder %v315_v4, 0.0  ;;  %v383_v11 = vmul.f32 %v693_v15, %v315_v4  ;;  %vm348_vm11 = vcmp.ge.f32.partialorder %v316_v6, 0.0  ;;  %v384_v12 = vmul.f32 %v693_v15, %v316_v6 }
  0x22   : > { %v413_v14 = vsel %vm345_vm8, %v313_v63, %v381_v9  ;;  %v414_v16 = vsel %vm346_vm9, %v314_v1, %v382_v10  ;;  %vm349_vm12 = vcmp.ge.f32.partialorder %v317_v7, 0.0  ;;  %v385_v17 = vmul.f32 %v693_v15, %v317_v7 }
  0x23   : > { %445 = vst [vmem:[%s714_s5 + $0x40] sm:$0xff] %v413_v14  ;;  %v415_v18 = vsel %vm347_vm10, %v315_v4, %v383_v11  ;;  %v416_v19 = vsel %vm348_vm11, %v316_v6, %v384_v12  ;;  %v318_v20 = vadd.f32 %v686_v5, %v282_v2  ;;  %v319_v21 = vadd.f32 %v686_v5, %v283_v8  ;;  %v613_v4 = vld [vmem:[%s673_s21 + $0x70] sm:$0xff]  }
  0x24   : > { %446 = vst [vmem:[%s714_s5 + $0x48] sm:$0xff] %v414_v16  ;;  %v417_v23 = vsel %vm349_vm12, %v317_v7, %v385_v17  ;;  %v284_v24 = vmul.f32 %v678_v0, %v567_v3  ;;  %v570_v25 = vunpack.c.l.bf16 %v607_v13  ;;  %v571_v26 = vunpack.c.h.bf16 %v607_v13  ;;  %v612_v3 = vld [vmem:[%s673_s21 + $0x68] sm:$0xff]  }
  0x25   : > { %447 = vst [vmem:[%s714_s5 + $0x50] sm:$0xff] %v415_v18  ;;  %vm350_vm13 = vcmp.ge.f32.partialorder %v318_v20, 0.0  ;;  %v386_v28 = vmul.f32 %v693_v15, %v318_v20  ;;  %vm351_vm14 = vcmp.ge.f32.partialorder %v319_v21, 0.0  ;;  %v387_v29 = vmul.f32 %v693_v15, %v319_v21 }
  0x26   : > { %448 = vst [vmem:[%s714_s5 + $0x58] sm:$0xff] %v416_v19  ;;  %v320_v30 = vadd.f32 %v686_v5, %v284_v24  ;;  %v285_v31 = vmul.f32 %v678_v0, %v570_v25  ;;  %v286_v32 = vmul.f32 %v678_v0, %v571_v26  ;;  %v574_v33 = vunpack.c.l.bf16 %v608_v22  ;;  %v614_v24 = vld [vmem:[%s673_s21 + $0x78] sm:$0xff]  }
  0x27   : > { %449 = vst [vmem:[%s714_s5 + $0x60] sm:$0xff] %v417_v23  ;;  %v418_v34 = vsel %vm350_vm13, %v318_v20, %v386_v28  ;;  %v419_v35 = vsel %vm351_vm14, %v319_v21, %v387_v29  ;;  %v575_v36 = vunpack.c.h.bf16 %v608_v22  ;;  %v578_v37 = vunpack.c.l.bf16 %v609_v27 }
  0x28   : > { %450 = vst [vmem:[%s714_s5 + $0x68] sm:$0xff] %v418_v34  ;;  %vm352_vm15 = vcmp.ge.f32.partialorder %v320_v30, 0.0  ;;  %v388_v38 = vmul.f32 %v693_v15, %v320_v30  ;;  %v321_v39 = vadd.f32 %v686_v5, %v285_v31  ;;  %v322_v40 = vadd.f32 %v686_v5, %v286_v32 }
  0x29   : > { %451 = vst [vmem:[%s714_s5 + $0x70] sm:$0xff] %v419_v35  ;;  %v287_v41 = vmul.f32 %v678_v0, %v574_v33  ;;  %v288_v42 = vmul.f32 %v678_v0, %v575_v36  ;;  %v289_v43 = vmul.f32 %v678_v0, %v578_v37  ;;  %v579_v44 = vunpack.c.h.bf16 %v609_v27 }
  0x2a   : > { %v420_v46 = vsel %vm352_vm15, %v320_v30, %v388_v38  ;;  %vm353_vm0 = vcmp.ge.f32.partialorder %v321_v39, 0.0  ;;  %v389_v47 = vmul.f32 %v693_v15, %v321_v39  ;;  %vm354_vm1 = vcmp.ge.f32.partialorder %v322_v40, 0.0 }
  0x2b   : > { %452 = vst [vmem:[%s714_s5 + $0x78] sm:$0xff] %v420_v46  ;;  %v390_v48 = vmul.f32 %v693_v15, %v322_v40  ;;  %v323_v49 = vadd.f32 %v686_v5, %v287_v41  ;;  %v324_v50 = vadd.f32 %v686_v5, %v288_v42  ;;  %v325_v51 = vadd.f32 %v686_v5, %v289_v43 }
  0x2c   : > { %v421_v52 = vsel %vm353_vm0, %v321_v39, %v389_v47  ;;  %v290_v53 = vmul.f32 %v678_v0, %v579_v44  ;;  %v582_v54 = vunpack.c.l.bf16 %v610_v45  ;;  %v583_v55 = vunpack.c.h.bf16 %v610_v45 }
  0x2d   : > { %453 = vst [vmem:[%s714_s5 + $0x80] sm:$0xff] %v421_v52  ;;  %v422_v57 = vsel %vm354_vm1, %v322_v40, %v390_v48  ;;  %vm355_vm2 = vcmp.ge.f32.partialorder %v323_v49, 0.0  ;;  %v391_v58 = vmul.f32 %v693_v15, %v323_v49  ;;  %vm356_vm3 = vcmp.ge.f32.partialorder %v324_v50, 0.0 }
  0x2e   : > { %454 = vst [vmem:[%s714_s5 + $0x88] sm:$0xff] %v422_v57  ;;  %v392_v59 = vmul.f32 %v693_v15, %v324_v50  ;;  %vm357_vm4 = vcmp.ge.f32.partialorder %v325_v51, 0.0  ;;  %v393_v60 = vmul.f32 %v693_v15, %v325_v51  ;;  %v326_v61 = vadd.f32 %v686_v5, %v290_v53 }
  0x2f   : > { %v423_v62 = vsel %vm355_vm2, %v323_v49, %v391_v58  ;;  %v291_v63 = vmul.f32 %v678_v0, %v582_v54  ;;  %v292_v1 = vmul.f32 %v678_v0, %v583_v55  ;;  %v586_v2 = vunpack.c.l.bf16 %v611_v56 }
  0x30   : > { %455 = vst [vmem:[%s714_s5 + $0x90] sm:$0xff] %v423_v62  ;;  %v424_v6 = vsel %vm356_vm3, %v324_v50, %v392_v59  ;;  %v425_v7 = vsel %vm357_vm4, %v325_v51, %v393_v60  ;;  %vm358_vm5 = vcmp.ge.f32.partialorder %v326_v61, 0.0  ;;  %v394_v8 = vmul.f32 %v693_v15, %v326_v61 }
  0x31   : > { %456 = vst [vmem:[%s714_s5 + $0x98] sm:$0xff] %v424_v6  ;;  %v327_v9 = vadd.f32 %v686_v5, %v291_v63  ;;  %v328_v10 = vadd.f32 %v686_v5, %v292_v1  ;;  %v293_v11 = vmul.f32 %v678_v0, %v586_v2  ;;  %v587_v12 = vunpack.c.h.bf16 %v611_v56 }
  0x32   : > { %457 = vst [vmem:[%s714_s5 + $0xa0] sm:$0xff] %v425_v7  ;;  %v426_v13 = vsel %vm358_vm5, %v326_v61, %v394_v8  ;;  %v590_v14 = vunpack.c.l.bf16 %v612_v3  ;;  %v591_v16 = vunpack.c.h.bf16 %v612_v3  ;;  %v594_v17 = vunpack.c.l.bf16 %v613_v4 }
  0x33   : > { %458 = vst [vmem:[%s714_s5 + $0xa8] sm:$0xff] %v426_v13  ;;  %vm359_vm6 = vcmp.ge.f32.partialorder %v327_v9, 0.0  ;;  %v395_v18 = vmul.f32 %v693_v15, %v327_v9  ;;  %vm360_vm7 = vcmp.ge.f32.partialorder %v328_v10, 0.0  ;;  %v396_v19 = vmul.f32 %v693_v15, %v328_v10 }
  0x34   : > { %v329_v20 = vadd.f32 %v686_v5, %v293_v11  ;;  %v294_v21 = vmul.f32 %v678_v0, %v587_v12  ;;  %v295_v22 = vmul.f32 %v678_v0, %v590_v14  ;;  %v296_v23 = vmul.f32 %v678_v0, %v591_v16 }
  0x35   : > { %v427_v25 = vsel %vm359_vm6, %v327_v9, %v395_v18  ;;  %v428_v26 = vsel %vm360_vm7, %v328_v10, %v396_v19  ;;  %v297_v27 = vmul.f32 %v678_v0, %v594_v17  ;;  %v595_v28 = vunpack.c.h.bf16 %v613_v4 }
  0x36   : > { %459 = vst [vmem:[%s714_s5 + $0xb0] sm:$0xff] %v427_v25  ;;  %vm361_vm8 = vcmp.ge.f32.partialorder %v329_v20, 0.0  ;;  %v397_v29 = vmul.f32 %v693_v15, %v329_v20  ;;  %v330_v30 = vadd.f32 %v686_v5, %v294_v21  ;;  %v331_v31 = vadd.f32 %v686_v5, %v295_v22 }
  0x37   : > { %460 = vst [vmem:[%s714_s5 + $0xb8] sm:$0xff] %v428_v26  ;;  %v332_v32 = vadd.f32 %v686_v5, %v296_v23  ;;  %v333_v33 = vadd.f32 %v686_v5, %v297_v27  ;;  %v298_v34 = vmul.f32 %v678_v0, %v595_v28  ;;  %v598_v35 = vunpack.c.l.bf16 %v614_v24 }
  0x38   : > { %v429_v36 = vsel %vm361_vm8, %v329_v20, %v397_v29  ;;  %vm362_vm9 = vcmp.ge.f32.partialorder %v330_v30, 0.0  ;;  %v398_v37 = vmul.f32 %v693_v15, %v330_v30  ;;  %vm363_vm10 = vcmp.ge.f32.partialorder %v331_v31, 0.0 }
  0x39   : > { %461 = vst [vmem:[%s714_s5 + $0xc0] sm:$0xff] %v429_v36  ;;  %v399_v38 = vmul.f32 %v693_v15, %v331_v31  ;;  %vm364_vm11 = vcmp.ge.f32.partialorder %v332_v32, 0.0  ;;  %v400_v39 = vmul.f32 %v693_v15, %v332_v32  ;;  %vm365_vm12 = vcmp.ge.f32.partialorder %v333_v33, 0.0 }
  0x3a   : > { %v430_v40 = vsel %vm362_vm9, %v330_v30, %v398_v37  ;;  %v401_v41 = vmul.f32 %v693_v15, %v333_v33  ;;  %v334_v42 = vadd.f32 %v686_v5, %v298_v34  ;;  %v299_v43 = vmul.f32 %v678_v0, %v598_v35 }
  0x3b   : > { %462 = vst [vmem:[%s714_s5 + $0xc8] sm:$0xff] %v430_v40  ;;  %v431_v44 = vsel %vm363_vm10, %v331_v31, %v399_v38  ;;  %v432_v45 = vsel %vm364_vm11, %v332_v32, %v400_v39  ;;  %v599_v46 = vunpack.c.h.bf16 %v614_v24 }
  0x3c   : > { %463 = vst [vmem:[%s714_s5 + $0xd0] sm:$0xff] %v431_v44  ;;  %v433_v47 = vsel %vm365_vm12, %v333_v33, %v401_v41  ;;  %vm366_vm13 = vcmp.ge.f32.partialorder %v334_v42, 0.0  ;;  %v402_v48 = vmul.f32 %v693_v15, %v334_v42  ;;  %v335_v49 = vadd.f32 %v686_v5, %v299_v43 }
  0x3d   : > { %464 = vst [vmem:[%s714_s5 + $0xd8] sm:$0xff] %v432_v45  ;;  %v300_v50 = vmul.f32 %v678_v0, %v599_v46 }
  0x3e   : > { %465 = vst [vmem:[%s714_s5 + $0xe0] sm:$0xff] %v433_v47  ;;  %v434_v51 = vsel %vm366_vm13, %v334_v42, %v402_v48  ;;  %vm367_vm14 = vcmp.ge.f32.partialorder %v335_v49, 0.0  ;;  %v403_v52 = vmul.f32 %v693_v15, %v335_v49 }
  0x3f   : > { %466 = vst [vmem:[%s714_s5 + $0xe8] sm:$0xff] %v434_v51  ;;  %v336_v53 = vadd.f32 %v686_v5, %v300_v50 }
  0x40   : > { %v435_v54 = vsel %vm367_vm14, %v335_v49, %v403_v52 }
  0x41   : > { %467 = vst [vmem:[%s714_s5 + $0xf0] sm:$0xff] %v435_v54  ;;  %vm368_vm15 = vcmp.ge.f32.partialorder %v336_v53, 0.0  ;;  %v404_v55 = vmul.f32 %v693_v15, %v336_v53 }
  0x43   : > { %v436_v56 = vsel %vm368_vm15, %v336_v53, %v404_v55 }
  0x44   : > { %468 = vst [vmem:[%s714_s5 + $0xf8] sm:$0xff] %v436_v56 }
  0x45 PF: > { %s14_s15 = sadd.s32 1, %s632_s15  }
  0x46   : > { %p11_p4 = scmp.ge.s32.totalorder %s14_s15, 4  }
  0x48   :  { %13 = sbr.rel (!%p11_p4) target bundleno = 1 (0x1), region = 66 }

// kernel: _forward_impl.2
= control target key start
LH: loop header
LB: loop body
LE: loop exit
PB: predicated region body
PF: predicated region fallthrough
CT: control target
= control target key end

     0   :  { %s1213_s15 = smov 0   ;;  %s1215_s16 = smov 0   ;;  %s1475_s0 = inlined_call_operand.vmem [shape: bf16[512,128], index: 0, kind: input, shape index: {}]   ;;  %s1476_s1 = inlined_call_operand.vmem [shape: bf16[128,128], index: 1, kind: input, shape index: {}]   ;;  %s1477_s2 = inlined_call_operand.vmem [shape: bf16[512,128], index: 2, kind: output, shape index: {0}]   ;;  %s1478_s3 = inlined_call_operand.vmem [shape: f32[1,128], index: 3, kind: output, shape index: {1}]   ;;  %s1479_s4 = inlined_call_operand.vmem [shape: f32[1,128], index: 4, kind: output, shape index: {2}]  }
   0x1   :  { %s1217_s17 = smov 0  }
   0x2 LB: > { %s24_s18 = sadd.s32 1, %s1181_s16  ;;  %p889_p0 = scmp.ge.s32.totalorder %s1185_s17, 1  ;;  %s1185_s17 = sphi %s1217_s17, %s15_s17   ;;  %s1181_s16 = sphi %s1215_s16, %s1481_s16   ;;  %s1177_s15 = sphi %s1213_s15, %s1480_s15  }
   0x3   : > { %p25_p1 = scmp.ge.s32.totalorder %s24_s18, 2  ;;  %p191_p2 = scmp.lt.s32.totalorder %s1185_s17, 3 }
   0x5   : > { %s1483_s18 = smov (%p25_p1, %s24_s18), 0  ;;  %p192_p3 = pnand %p889_p0, %p191_p2 }
   0x6   : > { %s890_s27 = sshll.u32 (!%p192_p3), %s1177_s15, 5  ;;  %p990_p5 = scmp.ne.s32.totalorder (!%p192_p3), %s1177_s15, 0 }
   0x7   : > { %195 = sbr.rel (%p192_p3) target bundleno = 319 (0x13f), region = 28  ;;  %p231_p4 = scmp.lt.s32.totalorder (!%p192_p3), %s890_s27, 63 }
   0xc   : > { %v1018_v0 = vld [vmem:[%s1476_s1 + $0x38] sm:$0xff]  ;;  %v1017_v1 = vld [vmem:[%s1476_s1 + $0x30] sm:$0xff]  ;;  %v1016_v2 = vld [vmem:[%s1476_s1 + $0x28] sm:$0xff]  ;;  %s1485_s27 = smov (!%p231_p4, %s890_s27), 63 }
   0xd   : > { %447 = vmatpush.bf16.msra.mxu0 %v1018_v0  ;;  %1114 = vmatpush.bf16.msra.mxu1 %v1018_v0  ;;  %v1015_v3 = vld [vmem:[%s1476_s1 + $0x20] sm:$0xff]  ;;  %v1014_v4 = vld [vmem:[%s1476_s1 + $0x18] sm:$0xff]  ;;  %v1013_v5 = vld [vmem:[%s1476_s1 + $0x10] sm:$0xff]  ;;  %s891_s8 = sshll.u32 %s1485_s27, 2 }
   0xe   : > { %1115 = vmatpush.bf16.msra.mxu2 %v1018_v0  ;;  %1116 = vmatpush.bf16.msra.mxu3 %v1018_v0  ;;  %v1012_v6 = vld [vmem:[%s1476_s1 + $0x8] sm:$0xff]  ;;  %v1011_v7 = vld [vmem:[%s1476_s1] sm:$0xff]  ;;  %s1266_s13 = scalar_lea.vmem %s1475_s0, %s891_s8  ;;  %s1293_s20 = scalar_lea.vmem %s1477_s2, %s891_s8 }
   0xf   : > { %v995_v8 = vld [vmem:[%s1266_s13] sm:$0xff]  ;;  %v996_v12 = vld [vmem:[%s1266_s13 + $0x8] sm:$0xff]  ;;  %v997_v16 = vld [vmem:[%s1266_s13 + $0x10] sm:$0xff] }
  0x10   : > { %v999_v9 = vld [vmem:[%s1266_s13 + $0x20] sm:$0xff]  ;;  %v1000_v13 = vld [vmem:[%s1266_s13 + $0x28] sm:$0xff]  ;;  %v1001_v17 = vld [vmem:[%s1266_s13 + $0x30] sm:$0xff] }
  0x11   : > { %448 = vmatpush.bf16.msra.mxu0 %v1017_v1  ;;  %1117 = vmatpush.bf16.msra.mxu1 %v1017_v1  ;;  %v1003_v10 = vld [vmem:[%s1266_s13 + $0x40] sm:$0xff]  ;;  %v1004_v14 = vld [vmem:[%s1266_s13 + $0x48] sm:$0xff]  ;;  %v1005_v18 = vld [vmem:[%s1266_s13 + $0x50] sm:$0xff] }
  0x12   : > { %1118 = vmatpush.bf16.msra.mxu2 %v1017_v1  ;;  %1119 = vmatpush.bf16.msra.mxu3 %v1017_v1  ;;  %v1007_v11 = vld [vmem:[%s1266_s13 + $0x60] sm:$0xff]  ;;  %v1008_v15 = vld [vmem:[%s1266_s13 + $0x68] sm:$0xff]  ;;  %v1009_v19 = vld [vmem:[%s1266_s13 + $0x70] sm:$0xff] }
  0x13   : > { %v998_v20 = vld [vmem:[%s1266_s13 + $0x18] sm:$0xff] }
  0x14   : > { %v1002_v21 = vld [vmem:[%s1266_s13 + $0x38] sm:$0xff] }
  0x15   : > { %449 = vmatpush.bf16.msra.mxu0 %v1016_v2  ;;  %1120 = vmatpush.bf16.msra.mxu1 %v1016_v2  ;;  %v1006_v22 = vld [vmem:[%s1266_s13 + $0x58] sm:$0xff] }
  0x16   : > { %1121 = vmatpush.bf16.msra.mxu2 %v1016_v2  ;;  %1122 = vmatpush.bf16.msra.mxu3 %v1016_v2  ;;  %v1010_v23 = vld [vmem:[%s1266_s13 + $0x78] sm:$0xff] }
  0x19   : > { %450 = vmatpush.bf16.msra.mxu0 %v1015_v3  ;;  %1123 = vmatpush.bf16.msra.mxu1 %v1015_v3 }
  0x1a   : > { %1124 = vmatpush.bf16.msra.mxu2 %v1015_v3  ;;  %1125 = vmatpush.bf16.msra.mxu3 %v1015_v3 }
  0x1d   : > { %451 = vmatpush.bf16.msra.mxu0 %v1014_v4  ;;  %1126 = vmatpush.bf16.msra.mxu1 %v1014_v4 }
  0x1e   : > { %1127 = vmatpush.bf16.msra.mxu2 %v1014_v4  ;;  %1128 = vmatpush.bf16.msra.mxu3 %v1014_v4 }
  0x21   : > { %452 = vmatpush.bf16.msra.mxu0 %v1013_v5  ;;  %1129 = vmatpush.bf16.msra.mxu1 %v1013_v5 }
  0x22   : > { %1130 = vmatpush.bf16.msra.mxu2 %v1013_v5  ;;  %1131 = vmatpush.bf16.msra.mxu3 %v1013_v5 }
  0x25   : > { %453 = vmatpush.bf16.msra.mxu0 %v1012_v6  ;;  %1132 = vmatpush.bf16.msra.mxu1 %v1012_v6 }
  0x26   : > { %1133 = vmatpush.bf16.msra.mxu2 %v1012_v6  ;;  %1134 = vmatpush.bf16.msra.mxu3 %v1012_v6 }
  0x29   : > { %454 = vmatpush.bf16.msra.mxu0 %v1011_v7  ;;  %1135 = vmatpush.bf16.msra.mxu1 %v1011_v7 }
  0x2a   : > { %1136 = vmatpush.bf16.msra.mxu2 %v1011_v7  ;;  %1137 = vmatpush.bf16.msra.mxu3 %v1011_v7 }
  0x2c   : > { %455 = vmatmul.bf16.vlgmr.msra.gmra.mxu0 %v995_v8  ;;  %475 = vmatmul.bf16.vlgmr.msra.gmra.mxu1 %v999_v9 }
  0x2d   : > { %495 = vmatmul.bf16.vlgmr.msra.gmra.mxu2 %v1003_v10  ;;  %515 = vmatmul.bf16.vlgmr.msra.gmra.mxu3 %v1007_v11 }
  0x3c   : > { %460 = vmatmul.bf16.gmra.mxu0 %v996_v12  ;;  %480 = vmatmul.bf16.gmra.mxu1 %v1000_v13 }
  0x3d   : > { %500 = vmatmul.bf16.gmra.mxu2 %v1004_v14  ;;  %520 = vmatmul.bf16.gmra.mxu3 %v1008_v15 }
  0x4c   : > { %465 = vmatmul.bf16.gmra.mxu0 %v997_v16  ;;  %485 = vmatmul.bf16.gmra.mxu1 %v1001_v17 }
  0x4d   : > { %505 = vmatmul.bf16.gmra.mxu2 %v1005_v18  ;;  %525 = vmatmul.bf16.gmra.mxu3 %v1009_v19 }
  0x5c   : > { %470 = vmatmul.bf16.gmra.mxu0 %v998_v20  ;;  %490 = vmatmul.bf16.gmra.mxu1 %v1002_v21 }
  0x5d   : > { %510 = vmatmul.bf16.gmra.mxu2 %v1006_v22  ;;  %530 = vmatmul.bf16.gmra.mxu3 %v1010_v23 }
  0xa9   : > { %v456_v24 = vpop.f32.mrf.mxu0  ;;  %v476_v25 = vpop.f32.mrf.mxu1 }
  0xaa   : > { %v536_v26 = vpack.c.bf16 %v456_v24, %v456_v24  ;;  %v544_v27 = vpack.c.bf16 %v476_v25, %v476_v25 }
  0xac   : > { %v1284_v28 = vunpack.c.l.bf16 %v536_v26  ;;  %v1286_v29 = vunpack.c.l.bf16 %v544_v27 }
  0xb0   : > { %v496_v30 = vpop.f32.mrf.mxu2  ;;  %v516_v31 = vpop.f32.mrf.mxu3 }
  0xb1   : > { %v552_v32 = vpack.c.bf16 %v496_v30, %v496_v30  ;;  %v560_v33 = vpack.c.bf16 %v516_v31, %v516_v31  ;;  %v458_v34 = vpop.f32.mrf.mxu0  ;;  %v478_v35 = vpop.f32.mrf.mxu1 }
  0xb2   : > { %v537_v36 = vpack.c.bf16 %v458_v34, %v458_v34  ;;  %v1022_v37 = vpack.c.bf16 %v458_v34, %v456_v24  ;;  %v545_v38 = vpack.c.bf16 %v478_v35, %v478_v35  ;;  %v1042_v39 = vpack.c.bf16 %v478_v35, %v476_v25 }
  0xb3   : > { %v1295_v40 = vunpack.c.l.bf16 %v552_v32  ;;  %v1297_v41 = vunpack.c.l.bf16 %v560_v33 }
  0xb4   : > { %1023 = vst [vmem:[%s1293_s20] sm:$0xff] %v1022_v37   ;;  %v1300_v42 = vunpack.c.l.bf16 %v537_v36  ;;  %v1302_v43 = vunpack.c.l.bf16 %v545_v38 }
  0xb5   : > { %1102 = vst [vmem:[%s1293_s20 + $0x20] sm:$0xff] %v1042_v39  }
  0xb8   : > { %v498_v44 = vpop.f32.mrf.mxu2  ;;  %v518_v45 = vpop.f32.mrf.mxu3 }
  0xb9   : > { %v553_v46 = vpack.c.bf16 %v498_v44, %v498_v44  ;;  %v1062_v47 = vpack.c.bf16 %v498_v44, %v496_v30  ;;  %v561_v48 = vpack.c.bf16 %v518_v45, %v518_v45  ;;  %v1082_v49 = vpack.c.bf16 %v518_v45, %v516_v31  ;;  %v461_v50 = vpop.f32.mrf.mxu0  ;;  %v481_v51 = vpop.f32.mrf.mxu1 }
  0xba   : > { %v538_v52 = vpack.c.bf16 %v461_v50, %v461_v50  ;;  %v546_v53 = vpack.c.bf16 %v481_v51, %v481_v51 }
  0xbb   : > { %1106 = vst [vmem:[%s1293_s20 + $0x40] sm:$0xff] %v1062_v47   ;;  %v1306_v54 = vunpack.c.l.bf16 %v553_v46  ;;  %v1308_v55 = vunpack.c.l.bf16 %v561_v48 }
  0xbc   : > { %1110 = vst [vmem:[%s1293_s20 + $0x60] sm:$0xff] %v1082_v49   ;;  %v1311_v56 = vunpack.c.l.bf16 %v538_v52  ;;  %v1313_v57 = vunpack.c.l.bf16 %v546_v53 }
  0xc0   : > { %v501_v58 = vpop.f32.mrf.mxu2  ;;  %v521_v59 = vpop.f32.mrf.mxu3 }
  0xc1   : > { %v554_v60 = vpack.c.bf16 %v501_v58, %v501_v58  ;;  %v562_v61 = vpack.c.bf16 %v521_v59, %v521_v59  ;;  %v463_v62 = vpop.f32.mrf.mxu0  ;;  %v483_v63 = vpop.f32.mrf.mxu1 }
  0xc2   : > { %v539_v0 = vpack.c.bf16 %v463_v62, %v463_v62  ;;  %v1027_v1 = vpack.c.bf16 %v463_v62, %v461_v50  ;;  %v547_v2 = vpack.c.bf16 %v483_v63, %v483_v63  ;;  %v1047_v3 = vpack.c.bf16 %v483_v63, %v481_v51 }
  0xc3   : > { %v1315_v4 = vunpack.c.l.bf16 %v554_v60  ;;  %v1317_v5 = vunpack.c.l.bf16 %v562_v61 }
  0xc4   : > { %1099 = vst [vmem:[%s1293_s20 + $0x8] sm:$0xff] %v1027_v1   ;;  %v1320_v6 = vunpack.c.l.bf16 %v539_v0  ;;  %v1322_v7 = vunpack.c.l.bf16 %v547_v2 }
  0xc5   : > { %1103 = vst [vmem:[%s1293_s20 + $0x28] sm:$0xff] %v1047_v3  }
  0xc8   : > { %v503_v8 = vpop.f32.mrf.mxu2  ;;  %v523_v9 = vpop.f32.mrf.mxu3 }
  0xc9   : > { %v555_v10 = vpack.c.bf16 %v503_v8, %v503_v8  ;;  %v1067_v11 = vpack.c.bf16 %v503_v8, %v501_v58  ;;  %v563_v12 = vpack.c.bf16 %v523_v9, %v523_v9  ;;  %v1087_v13 = vpack.c.bf16 %v523_v9, %v521_v59  ;;  %v466_v14 = vpop.f32.mrf.mxu0  ;;  %v486_v15 = vpop.f32.mrf.mxu1 }
  0xca   : > { %v540_v16 = vpack.c.bf16 %v466_v14, %v466_v14  ;;  %v548_v17 = vpack.c.bf16 %v486_v15, %v486_v15 }
  0xcb   : > { %1107 = vst [vmem:[%s1293_s20 + $0x48] sm:$0xff] %v1067_v11   ;;  %v1326_v18 = vunpack.c.l.bf16 %v555_v10  ;;  %v1328_v19 = vunpack.c.l.bf16 %v563_v12 }
  0xcc   : > { %1111 = vst [vmem:[%s1293_s20 + $0x68] sm:$0xff] %v1087_v13   ;;  %v1331_v20 = vunpack.c.l.bf16 %v540_v16  ;;  %v1333_v21 = vunpack.c.l.bf16 %v548_v17 }
  0xd0   : > { %v506_v22 = vpop.f32.mrf.mxu2  ;;  %v526_v23 = vpop.f32.mrf.mxu3 }
  0xd1   : > { %v556_v24 = vpack.c.bf16 %v506_v22, %v506_v22  ;;  %v564_v25 = vpack.c.bf16 %v526_v23, %v526_v23  ;;  %v468_v26 = vpop.f32.mrf.mxu0  ;;  %v488_v27 = vpop.f32.mrf.mxu1 }
  0xd2   : > { %v541_v30 = vpack.c.bf16 %v468_v26, %v468_v26  ;;  %v1032_v31 = vpack.c.bf16 %v468_v26, %v466_v14  ;;  %v549_v32 = vpack.c.bf16 %v488_v27, %v488_v27  ;;  %v1052_v33 = vpack.c.bf16 %v488_v27, %v486_v15 }
  0xd3   : > { %v1335_v34 = vunpack.c.l.bf16 %v556_v24  ;;  %v1337_v35 = vunpack.c.l.bf16 %v564_v25 }
  0xd4   : > { %1100 = vst [vmem:[%s1293_s20 + $0x10] sm:$0xff] %v1032_v31   ;;  %v605_v36 = vunpack.c.l.bf16 %v541_v30  ;;  %v1340_v37 = vunpack.c.l.bf16 %v549_v32 }
  0xd5   : > { %1104 = vst [vmem:[%s1293_s20 + $0x30] sm:$0xff] %v1052_v33  }
  0xd8   : > { %v508_v38 = vpop.f32.mrf.mxu2  ;;  %v528_v39 = vpop.f32.mrf.mxu3 }
  0xd9   : > { %v557_v44 = vpack.c.bf16 %v508_v38, %v508_v38  ;;  %v1072_v45 = vpack.c.bf16 %v508_v38, %v506_v22  ;;  %v565_v46 = vpack.c.bf16 %v528_v39, %v528_v39  ;;  %v1092_v47 = vpack.c.bf16 %v528_v39, %v526_v23  ;;  %v471_v48 = vpop.f32.mrf.mxu0  ;;  %v491_v49 = vpop.f32.mrf.mxu1 }
  0xda   : > { %v542_v50 = vpack.c.bf16 %v471_v48, %v471_v48  ;;  %v550_v51 = vpack.c.bf16 %v491_v49, %v491_v49 }
  0xdb   : > { %1108 = vst [vmem:[%s1293_s20 + $0x50] sm:$0xff] %v1072_v45   ;;  %v1344_v52 = vunpack.c.l.bf16 %v557_v44  ;;  %v1346_v53 = vunpack.c.l.bf16 %v565_v46 }
  0xdc   : > { %1112 = vst [vmem:[%s1293_s20 + $0x70] sm:$0xff] %v1092_v47   ;;  %v606_v58 = vunpack.c.l.bf16 %v542_v50  ;;  %v1349_v59 = vunpack.c.l.bf16 %v550_v51 }
  0xe0   : > { %v511_v60 = vpop.f32.mrf.mxu2  ;;  %v531_v61 = vpop.f32.mrf.mxu3 }
  0xe1   : > { %v558_v62 = vpack.c.bf16 %v511_v60, %v511_v60  ;;  %v566_v63 = vpack.c.bf16 %v531_v61, %v531_v61  ;;  %v473_v0 = vpop.f32.mrf.mxu0  ;;  %v493_v1 = vpop.f32.mrf.mxu1 }
  0xe2   : > { %v543_v2 = vpack.c.bf16 %v473_v0, %v473_v0  ;;  %v1037_v3 = vpack.c.bf16 %v473_v0, %v471_v48  ;;  %v551_v8 = vpack.c.bf16 %v493_v1, %v493_v1  ;;  %v1057_v9 = vpack.c.bf16 %v493_v1, %v491_v49 }
  0xe3   : > { %v1351_v10 = vunpack.c.l.bf16 %v558_v62  ;;  %v1353_v11 = vunpack.c.l.bf16 %v566_v63 }
  0xe4   : > { %1101 = vst [vmem:[%s1293_s20 + $0x18] sm:$0xff] %v1037_v3   ;;  %v607_v12 = vunpack.c.l.bf16 %v543_v2  ;;  %v615_v13 = vunpack.c.l.bf16 %v551_v8 }
  0xe5   : > { %1105 = vst [vmem:[%s1293_s20 + $0x38] sm:$0xff] %v1057_v9  }
  0xe8   : > { %v513_v14 = vpop.f32.mrf.mxu2  ;;  %v533_v15 = vpop.f32.mrf.mxu3  ;;  %635 = sbr.rel (%p990_p5) target bundleno = 240 (0xf0), region = 32 }
  0xe9   : > { %v559_v16 = vpack.c.bf16 %v513_v14, %v513_v14  ;;  %v1077_v17 = vpack.c.bf16 %v513_v14, %v511_v60  ;;  %v567_v22 = vpack.c.bf16 %v533_v15, %v533_v15  ;;  %v1097_v23 = vpack.c.bf16 %v533_v15, %v531_v61 }
  0xeb   : > { %1109 = vst [vmem:[%s1293_s20 + $0x58] sm:$0xff] %v1077_v17   ;;  %v1358_v24 = vunpack.c.l.bf16 %v559_v16  ;;  %v1360_v25 = vunpack.c.l.bf16 %v567_v22 }
  0xec   : > { %1113 = vst [vmem:[%s1293_s20 + $0x78] sm:$0xff] %v1097_v23  }
  0xed   : > { %v1187_v26 = vmov 0.0  }
  0xee   : > { %636 = vst [vmem:[%s1478_s3] sm:$0x1] %v1187_v26 }
  0xef   : > { %637 = vst [vmem:[%s1479_s4] sm:$0x1] %v1187_v26 }
  0xf0 PF: > { %v639_v27 = vadd.f32 %v1300_v42, %v1284_v28  ;;  %v679_v30 = vmul.f32 %v1284_v28, %v1284_v28  ;;  %v680_v31 = vmul.f32 %v1300_v42, %v1300_v42  ;;  %v681_v33 = vmul.f32 %v1311_v56, %v1311_v56 }
  0xf1   : > { %v682_v39 = vmul.f32 %v1320_v6, %v1320_v6  ;;  %v683_v46 = vmul.f32 %v1331_v20, %v1331_v20  ;;  %v684_v48 = vmul.f32 %v605_v36, %v605_v36  ;;  %v685_v50 = vmul.f32 %v606_v58, %v606_v58 }
  0xf2   : > { %v640_v32 = vadd.f32 %v639_v27, %v1311_v56  ;;  %v711_v44 = vadd.f32 %v680_v31, %v679_v30  ;;  %v686_v56 = vmul.f32 %v607_v12, %v607_v12  ;;  %v690_v8 = vmul.f32 %v1322_v7, %v1322_v7 }
  0xf3   : > { %v692_v15 = vmul.f32 %v1340_v37, %v1340_v37  ;;  %v693_v17 = vmul.f32 %v1349_v59, %v1349_v59  ;;  %v694_v23 = vmul.f32 %v615_v13, %v615_v13 }
  0xf4   : > { %v641_v38 = vadd.f32 %v640_v32, %v1320_v6  ;;  %v712_v28 = vadd.f32 %v711_v44, %v681_v33  ;;  %v687_v6 = vmul.f32 %v1286_v29, %v1286_v29 }
  0xf6   : > { %v642_v45 = vadd.f32 %v641_v38, %v1331_v20  ;;  %v713_v42 = vadd.f32 %v712_v28, %v682_v39  ;;  %v688_v20 = vmul.f32 %v1302_v43, %v1302_v43  ;;  %v698_v39 = vmul.f32 %v1326_v18, %v1326_v18 }
  0xf7   : > { %v700_v28 = vmul.f32 %v1344_v52, %v1344_v52 }
  0xf8   : > { %v643_v47 = vadd.f32 %v642_v45, %v605_v36  ;;  %v714_v51 = vadd.f32 %v713_v42, %v683_v46  ;;  %v699_v45 = vmul.f32 %v1335_v34, %v1335_v34 }
  0xfa   : > { %v644_v49 = vadd.f32 %v643_v47, %v606_v58  ;;  %v715_v61 = vadd.f32 %v714_v51, %v684_v48  ;;  %v689_v58 = vmul.f32 %v1313_v57, %v1313_v57  ;;  %v701_v48 = vmul.f32 %v1351_v10, %v1351_v10 }
  0xfb   : > { %v703_v51 = vmul.f32 %v1297_v41, %v1297_v41 }
  0xfc   : > { %v645_v60 = vadd.f32 %v644_v49, %v607_v12  ;;  %v716_v63 = vadd.f32 %v715_v61, %v685_v50  ;;  %v691_v12 = vmul.f32 %v1333_v21, %v1333_v21  ;;  %v702_v49 = vmul.f32 %v1358_v24, %v1358_v24 }
  0xfe   : > { %v646_v62 = vadd.f32 %v645_v60, %v1286_v29  ;;  %v717_v1 = vadd.f32 %v716_v63, %v686_v56  ;;  %v704_v56 = vmul.f32 %v1308_v55, %v1308_v55  ;;  %v706_v63 = vmul.f32 %v1328_v19, %v1328_v19 }
 0x100   : > { %v647_v0 = vadd.f32 %v646_v62, %v1302_v43  ;;  %v718_v2 = vadd.f32 %v717_v1, %v687_v6  ;;  %v705_v62 = vmul.f32 %v1317_v5, %v1317_v5 }
 0x102   : > { %v648_v36 = vadd.f32 %v647_v0, %v1313_v57  ;;  %v719_v9 = vadd.f32 %v718_v2, %v688_v20  ;;  %v707_v20 = vmul.f32 %v1337_v35, %v1337_v35  ;;  %v709_v2 = vmul.f32 %v1353_v11, %v1353_v11 }
 0x104   : > { %v649_v3 = vadd.f32 %v648_v36, %v1322_v7  ;;  %v720_v14 = vadd.f32 %v719_v9, %v689_v58  ;;  %v708_v36 = vmul.f32 %v1346_v53, %v1346_v53 }
 0x106   : > { %v650_v29 = vadd.f32 %v649_v3, %v1333_v21  ;;  %v721_v16 = vadd.f32 %v720_v14, %v690_v8  ;;  %v695_v21 = vmul.f32 %v1295_v40, %v1295_v40  ;;  %v710_v8 = vmul.f32 %v1360_v25, %v1360_v25 }
 0x108   : > { %v651_v43 = vadd.f32 %v650_v29, %v1340_v37  ;;  %v722_v22 = vadd.f32 %v721_v16, %v691_v12  ;;  %v696_v37 = vmul.f32 %v1306_v54, %v1306_v54 }
 0x10a   : > { %v652_v57 = vadd.f32 %v651_v43, %v1349_v59  ;;  %v723_v26 = vadd.f32 %v722_v22, %v692_v15  ;;  %v697_v59 = vmul.f32 %v1315_v4, %v1315_v4 }
 0x10c   : > { %v653_v7 = vadd.f32 %v652_v57, %v615_v13  ;;  %v724_v30 = vadd.f32 %v723_v26, %v693_v17 }
 0x10e   : > { %v654_v27 = vadd.f32 %v653_v7, %v1295_v40  ;;  %v725_v32 = vadd.f32 %v724_v30, %v694_v23 }
 0x110   : > { %v655_v31 = vadd.f32 %v654_v27, %v1306_v54  ;;  %v726_v38 = vadd.f32 %v725_v32, %v695_v21 }
 0x112   : > { %v656_v33 = vadd.f32 %v655_v31, %v1315_v4  ;;  %v727_v44 = vadd.f32 %v726_v38, %v696_v37 }
 0x114   : > { %v657_v13 = vadd.f32 %v656_v33, %v1326_v18  ;;  %v728_v46 = vadd.f32 %v727_v44, %v697_v59 }
 0x116   : > { %v658_v40 = vadd.f32 %v657_v13, %v1335_v34  ;;  %v729_v47 = vadd.f32 %v728_v46, %v698_v39 }
 0x118   : > { %v659_v54 = vadd.f32 %v658_v40, %v1344_v52  ;;  %v730_v42 = vadd.f32 %v729_v47, %v699_v45 }
 0x11a   : > { %v660_v4 = vadd.f32 %v659_v54, %v1351_v10  ;;  %v731_v50 = vadd.f32 %v730_v42, %v700_v28 }
 0x11c   : > { %v661_v18 = vadd.f32 %v660_v4, %v1358_v24  ;;  %v732_v60 = vadd.f32 %v731_v50, %v701_v48 }
 0x11e   : > { %v662_v34 = vadd.f32 %v661_v18, %v1297_v41  ;;  %v733_v61 = vadd.f32 %v732_v60, %v702_v49 }
 0x120   : > { %v663_v52 = vadd.f32 %v662_v34, %v1308_v55  ;;  %v734_v6 = vadd.f32 %v733_v61, %v703_v51 }
 0x122   : > { %v664_v10 = vadd.f32 %v663_v52, %v1317_v5  ;;  %v735_v0 = vadd.f32 %v734_v6, %v704_v56 }
 0x124   : > { %v665_v24 = vadd.f32 %v664_v10, %v1328_v19  ;;  %v736_v1 = vadd.f32 %v735_v0, %v705_v62 }
 0x126   : > { %v666_v41 = vadd.f32 %v665_v24, %v1337_v35  ;;  %v737_v58 = vadd.f32 %v736_v1, %v706_v63 }
 0x128   : > { %v667_v55 = vadd.f32 %v666_v41, %v1346_v53  ;;  %v738_v3 = vadd.f32 %v737_v58, %v707_v20 }
 0x12a   : > { %v668_v5 = vadd.f32 %v667_v55, %v1353_v11  ;;  %v739_v9 = vadd.f32 %v738_v3, %v708_v36  ;;  %v638_v11 = vld [vmem:[%s1478_s3] sm:$0x1] }
 0x12c   : > { %v669_v19 = vadd.f32 %v668_v5, %v1360_v25  ;;  %v740_v29 = vadd.f32 %v739_v9, %v709_v2  ;;  %v678_v25 = vld [vmem:[%s1479_s4] sm:$0x1] }
 0x12e   : > { %v670_v35 = vrot.slane %v669_v19, 4  ;;  %v741_v14 = vadd.f32 %v740_v29, %v710_v8 }
 0x130   : > { %v671_v12 = vadd.f32 %v670_v35, %v669_v19  ;;  %v742_v15 = vrot.slane %v741_v14, 4 }
 0x132   : > { %v672_v43 = vrot.slane %v671_v12, 2  ;;  %v743_v16 = vadd.f32 %v742_v15, %v741_v14 }
 0x134   : > { %v673_v53 = vadd.f32 %v672_v43, %v671_v12  ;;  %v744_v17 = vrot.slane %v743_v16, 2 }
 0x136   : > { %v674_v57 = vrot.slane %v673_v53, 1  ;;  %v745_v7 = vadd.f32 %v744_v17, %v743_v16 }
 0x138   : > { %v675_v22 = vadd.f32 %v674_v57, %v673_v53  ;;  %v746_v26 = vrot.slane %v745_v7, 1 }
 0x13a   : > { %v676_v23 = vadd.f32 %v675_v22, %v638_v11  ;;  %v747_v27 = vadd.f32 %v746_v26, %v745_v7 }
 0x13c   : > { %677 = vst [vmem:[%s1478_s3] sm:$0x1] %v676_v23  ;;  %v748_v21 = vadd.f32 %v747_v27, %v678_v25 }
 0x13e   : > { %749 = vst [vmem:[%s1479_s4] sm:$0x1] %v748_v21 }
 0x13f PF: > { %s15_s17 = sadd.s32 1, %s1185_s17   ;;  %s1480_s15 = smov %s1181_s16 }
 0x140   : > { %p12_p6 = scmp.ge.s32.totalorder %s15_s17, 4   ;;  %s1481_s16 = smov %s1483_s18 }
 0x142   :  { %14 = sbr.rel (!%p12_p6) target bundleno = 2 (0x2), region = 89 }

</bundles_post_ra>
